<compile_context>
chip_gen: v7x
topology: tpu7x:2x2x1
jax: 0.10.0
libtpu: 0.0.40
codegen_flags: <defaults>
</compile_context>

<pallas_src>
import functools

import jax
import jax.numpy as jnp
from jax.experimental import pallas as pl
from jax.experimental.pallas import tpu as pltpu


def _round_up(x, m):
    return ((x + m - 1) // m) * m


def _navf_triplet_kernel(seg_ref, a_ref, p_ref, n_ref, out_ref, acc_ref, *,
                         tile_rows, fold, blocks_per_shard, n_true):
    c = pl.program_id(0)   # row-range shard ("parallel", one per TensorCore)
    r = pl.program_id(1)   # row block within the shard ("arbitrary")

    @pl.when(r == 0)
    def _init():
        acc_ref[...] = jnp.zeros_like(acc_ref)

    a = a_ref[...].astype(jnp.float32)
    d = n_ref[...].astype(jnp.float32) - p_ref[...].astype(jnp.float32)
    prod = a * d                                       # (tile_rows, fold*E) f32

    # Segmented per-original-row reduce on the MXU.  seg_ref is the 0/1 segment
    # matrix (exact in bf16); prod is split hi/mid/lo so three single-pass bf16
    # matmuls reproduce the f32 result to ~2^-24 relative error.
    seg = seg_ref[...]                                 # (fold*E, fold) bf16
    hi = prod.astype(jnp.bfloat16)
    rem = prod - hi.astype(jnp.float32)
    mid = rem.astype(jnp.bfloat16)
    lo = (rem - mid.astype(jnp.float32)).astype(jnp.bfloat16)
    row_sums = (jnp.dot(hi, seg, preferred_element_type=jnp.float32) +
                jnp.dot(mid, seg, preferred_element_type=jnp.float32) +
                jnp.dot(lo, seg, preferred_element_type=jnp.float32))
    # row_sums[t, s] = <a, neg> - <a, pos> of original row
    #   ((c * blocks_per_shard + r) * tile_rows + t) * fold + s

    # Hinge + mask of rows past the true N (ragged last block, fold padding,
    # clamped out-of-range shard blocks).  The mask depends only on the grid
    # position, never on (possibly garbage) out-of-bounds tile data.
    base = (c * blocks_per_shard + r) * tile_rows * fold
    t_ids = jax.lax.broadcasted_iota(jnp.int32, row_sums.shape, 0)
    s_ids = jax.lax.broadcasted_iota(jnp.int32, row_sums.shape, 1)
    valid = (t_ids * fold + s_ids) < (n_true - base)
    hinge = jnp.where(valid, jnp.maximum(row_sums, 0.0), 0.0)

    # Lane-wise partial sums; the single cross-lane reduce runs at finalize.
    acc_ref[...] += jnp.sum(hinge, axis=0, keepdims=True)      # (1, fold)

    @pl.when(r == pl.num_programs(1) - 1)
    def _finalize():
        total = jnp.sum(acc_ref[...], axis=1, keepdims=True)   # (1, 1)
        out_ref[...] = jnp.broadcast_to(total[None, :, :], out_ref.shape)


def navf_triplet_loss(anchor, positive, negative, *,
                      max_tile_rows=2048, jax_fallback_below=65536):
    """mean(relu(<a, neg> - <a, pos>)) over rows of (N, E) inputs."""
    assert anchor.shape == positive.shape == negative.shape
    assert anchor.ndim == 2
    n, e = anchor.shape

    # Tiny-problem fast path: a fused XLA mul/relu/mean beats kernel launch
    # latency at small sizes.  (The demo passes jax_fallback_below=0 so the
    # Pallas path is always exercised.)
    if n * e < jax_fallback_below:
        matched = jnp.sum(anchor * positive, axis=-1)
        mismatched = jnp.sum(anchor * negative, axis=-1)
        return jnp.mean(jnp.maximum(mismatched - matched, 0.0))

    # Lane-dense folding: pack `fold` consecutive rows into one folded row so
    # the last dim is 128-lane dense and the MXU contraction depth is 256.
    fold = 256 // e if (e <= 256 and 256 % e == 0) else 1
    fe = fold * e

    n_pf = _round_up(n, fold)
    rows = n_pf // fold
    # For tiny inputs pad up to one full 16-row tile so the single block never
    # exceeds the array; for large inputs no row padding is done (ragged last
    # blocks are masked in the kernel).
    rows_pad = 16 if rows < 16 else rows
    n_padded = rows_pad * fold

    def prep(x):
        if n_padded != n:
            # Only triggers when N % fold != 0 or N is tiny; padded rows are
            # zero and additionally masked inside the kernel.
            x = jnp.pad(x, ((0, n_padded - n), (0, 0)))
        return x.reshape(rows_pad, fe)

    a2, p2, n2 = prep(anchor), prep(positive), prep(negative)

    # 0/1 segment matrix (lane -> original row within the fold), exact in bf16.
    seg = (jnp.arange(fe, dtype=jnp.int32)[:, None] // e ==
           jnp.arange(fold, dtype=jnp.int32)[None, :]).astype(jnp.bfloat16)

    # Row tile: as large as possible while (3 inputs x 2 pipeline buffers) plus
    # the in-kernel f32 temporaries stay well inside the 32 MiB scoped-VMEM
    # limit (safe on v5e/v6e 128 MiB and v7x 64 MiB physical VMEM).
    f32_row_bytes = fe * 4
    vmem_rows_cap = max(16, ((24 * 1024 * 1024) // (12 * f32_row_bytes)) // 16 * 16)
    tile_rows = min(max_tile_rows, vmem_rows_cap, _round_up(rows_pad, 16))
    tile_rows = max(16, (tile_rows // 16) * 16)   # satisfies f32 (8,) and bf16 (16,) sublane rules

    num_blocks = -(-rows_pad // tile_rows)
    # Leading "parallel" axis: uses both TensorCores on v7x; near-free on 1-TC
    # v5e / v6e (at most one duplicated, fully-masked block when num_blocks is odd).
    num_shards = 2 if num_blocks >= 2 else 1
    blocks_per_shard = -(-num_blocks // num_shards)
    last_block = num_blocks - 1

    def row_index(cidx, ridx):
        # Clamp so every DMA stays in bounds; over-clamped (duplicate) blocks
        # are fully masked inside the kernel and contribute zero.
        return (jnp.minimum(cidx * blocks_per_shard + ridx, last_block), 0)

    kernel = functools.partial(
        _navf_triplet_kernel,
        tile_rows=tile_rows, fold=fold,
        blocks_per_shard=blocks_per_shard, n_true=n)

    partials = pl.pallas_call(
        kernel,
        out_shape=jax.ShapeDtypeStruct((num_shards, 8, 128), jnp.float32),
        grid_spec=pltpu.PrefetchScalarGridSpec(
            num_scalar_prefetch=0,
            grid=(num_shards, blocks_per_shard),
            in_specs=[
                # Segment matrix: constant index_map -> DMA'd once, resident.
                pl.BlockSpec((fe, fold), lambda cidx, ridx: (0, 0)),
                pl.BlockSpec((tile_rows, fe), row_index),
                pl.BlockSpec((tile_rows, fe), row_index),
                pl.BlockSpec((tile_rows, fe), row_index),
            ],
            out_specs=pl.BlockSpec((1, 8, 128), lambda cidx, ridx: (cidx, 0, 0)),
            scratch_shapes=[pltpu.VMEM((1, fold), jnp.float32)],
        ),
        compiler_params=pltpu.CompilerParams(
            dimension_semantics=("parallel", "arbitrary"),
            vmem_limit_bytes=32 * 1024 * 1024,
        ),
    )(seg, a2, p2, n2)

    # Per-shard partial sums -> mean over the true N rows.
    return jnp.sum(partials[:, 0, 0]) / n


if __name__ == "__main__":
    def reference(a, p, g):
        matched = jnp.sum(a * p, axis=-1)
        mismatched = jnp.sum(a * g, axis=-1)
        return jnp.mean(jnp.maximum(mismatched - matched, 0.0))

    # --- Test 1: the module's nominal small shape (force the Pallas path). ---
    key = jax.random.PRNGKey(0)
    k1, k2, k3 = jax.random.split(key, 3)
    N, E = 8, 32
    anchor = jax.random.normal(k1, (N, E), dtype=jnp.float32)
    positive = jax.random.normal(k2, (N, E), dtype=jnp.float32)
    negative = jax.random.normal(k3, (N, E), dtype=jnp.float32)

    loss = navf_triplet_loss(anchor, positive, negative, jax_fallback_below=0)
    jax.block_until_ready(loss)
    ref = reference(anchor, positive, negative)
    assert jnp.allclose(loss, ref, atol=1e-5, rtol=1e-5), (loss, ref)

    # --- Test 2: larger ragged case exercising the multi-block grid, the 2-way
    #     core split, a ragged last block and the fold-remainder pad. ---
    N2, E2 = 4001, 32
    kk1, kk2, kk3 = jax.random.split(jax.random.PRNGKey(1), 3)
    a_big = jax.random.normal(kk1, (N2, E2), dtype=jnp.float32)
    p_big = jax.random.normal(kk2, (N2, E2), dtype=jnp.float32)
    g_big = jax.random.normal(kk3, (N2, E2), dtype=jnp.float32)

    loss2 = navf_triplet_loss(a_big, p_big, g_big, max_tile_rows=64)
    jax.block_until_ready(loss2)
    ref2 = reference(a_big, p_big, g_big)
    assert jnp.allclose(loss2, ref2, atol=1e-5, rtol=2e-5), (loss2, ref2)

    print("KERNEL_OK")
</pallas_src>

<mosaic_0001>
module attributes {stable_mosaic.version = 11 : i64} {
  func.func @_navf_triplet_kernel(%arg0: i32, %arg1: i32, %arg2: memref<256x8xbf16, #tpu.memory_space<vmem>>, %arg3: memref<16x256xf32, #tpu.memory_space<vmem>>, %arg4: memref<16x256xf32, #tpu.memory_space<vmem>>, %arg5: memref<16x256xf32, #tpu.memory_space<vmem>>, %arg6: memref<1x8x128xf32, #tpu.memory_space<vmem>>, %arg7: memref<1x8xf32, #tpu.memory_space<vmem>>) attributes {dimension_semantics = [#tpu.dimension_semantics<parallel>, #tpu.dimension_semantics<arbitrary>], iteration_bounds = array<i64: 1, 1>, scalar_prefetch = 0 : i64, scratch_operands = 1 : i64, tpu.core_type = #tpu.core_type<tc>, window_params = [{pipeline_mode = #tpu.pipeline_mode<synchronous>, transform_indices = @transform_0, window_bounds = array<i64: 256, 8>}, {transform_indices = @transform_1, window_bounds = array<i64: 16, 256>}, {transform_indices = @transform_2, window_bounds = array<i64: 16, 256>}, {transform_indices = @transform_3, window_bounds = array<i64: 16, 256>}, {transform_indices = @transform_4, window_bounds = array<i64: 1, 8, 128>}]} {
    %c0_i32 = arith.constant 0 : i32
    %0 = arith.cmpi eq, %arg1, %c0_i32 : i32
    %1 = arith.extui %0 : i1 to i32
    %c0_i32_0 = arith.constant 0 : i32
    %2 = arith.cmpi ne, %1, %c0_i32_0 : i32
    scf.if %2 {
      %cst_21 = arith.constant 0.000000e+00 : f32
      %45 = vector.broadcast %cst_21 : f32 to vector<1x8xf32>
      %c0_22 = arith.constant 0 : index
      %c0_23 = arith.constant 0 : index
      %46 = vector.load %arg7[%c0_22, %c0_23] : memref<1x8xf32, #tpu.memory_space<vmem>>, vector<1x8xf32>
      tpu.vector_store %arg7[%c0_22, %c0_23], %45 {strides = array<i32>} : memref<1x8xf32, #tpu.memory_space<vmem>>, vector<1x8xf32>,
    } else {
    }
    %c0 = arith.constant 0 : index
    %c0_1 = arith.constant 0 : index
    %3 = vector.load %arg3[%c0, %c0_1] : memref<16x256xf32, #tpu.memory_space<vmem>>, vector<16x256xf32>
    %c0_2 = arith.constant 0 : index
    %c0_3 = arith.constant 0 : index
    %4 = vector.load %arg5[%c0_2, %c0_3] : memref<16x256xf32, #tpu.memory_space<vmem>>, vector<16x256xf32>
    %c0_4 = arith.constant 0 : index
    %c0_5 = arith.constant 0 : index
    %5 = vector.load %arg4[%c0_4, %c0_5] : memref<16x256xf32, #tpu.memory_space<vmem>>, vector<16x256xf32>
    %6 = arith.subf %4, %5 : vector<16x256xf32>
    %7 = arith.mulf %3, %6 : vector<16x256xf32>
    %c0_6 = arith.constant 0 : index
    %c0_7 = arith.constant 0 : index
    %8 = vector.load %arg2[%c0_6, %c0_7] : memref<256x8xbf16, #tpu.memory_space<vmem>>, vector<256x8xbf16>
    %9 = arith.truncf %7 : vector<16x256xf32> to vector<16x256xbf16>
    %10 = arith.extf %9 : vector<16x256xbf16> to vector<16x256xf32>
    %11 = arith.subf %7, %10 : vector<16x256xf32>
    %12 = arith.truncf %11 : vector<16x256xf32> to vector<16x256xbf16>
    %13 = arith.extf %12 : vector<16x256xbf16> to vector<16x256xf32>
    %14 = arith.subf %11, %13 : vector<16x256xf32>
    %15 = arith.truncf %14 : vector<16x256xf32> to vector<16x256xbf16>
    %cst = arith.constant dense<0.000000e+00> : vector<16x8xf32>
    %16 = tpu.matmul %9, %8, %cst {dimension_numbers = #tpu.dot_dimension_numbers<[1], [0], [0], [1], [0, 0, 1, 1], [], []>} : vector<16x256xbf16>, vector<256x8xbf16>, vector<16x8xf32> -> vector<16x8xf32>
    %cst_8 = arith.constant dense<0.000000e+00> : vector<16x8xf32>
    %17 = tpu.matmul %12, %8, %cst_8 {dimension_numbers = #tpu.dot_dimension_numbers<[1], [0], [0], [1], [0, 0, 1, 1], [], []>} : vector<16x256xbf16>, vector<256x8xbf16>, vector<16x8xf32> -> vector<16x8xf32>
    %18 = arith.addf %16, %17 : vector<16x8xf32>
    %cst_9 = arith.constant dense<0.000000e+00> : vector<16x8xf32>
    %19 = tpu.matmul %15, %8, %cst_9 {dimension_numbers = #tpu.dot_dimension_numbers<[1], [0], [0], [1], [0, 0, 1, 1], [], []>} : vector<16x256xbf16>, vector<256x8xbf16>, vector<16x8xf32> -> vector<16x8xf32>
    %20 = arith.addf %18, %19 : vector<16x8xf32>
    %c1_i32 = arith.constant 1 : i32
    %21 = arith.muli %arg0, %c1_i32 : i32
    %22 = arith.addi %21, %arg1 : i32
    %c16_i32 = arith.constant 16 : i32
    %23 = arith.muli %22, %c16_i32 : i32
    %c8_i32 = arith.constant 8 : i32
    %24 = arith.muli %23, %c8_i32 : i32
    %25 = tpu.iota {dimensions = array<i32: 0>} : vector<16x8xi32>
    %26 = tpu.iota {dimensions = array<i32: 1>} : vector<16x8xi32>
    %c8_i32_10 = arith.constant 8 : i32
    %27 = vector.broadcast %c8_i32_10 : i32 to vector<16x8xi32>
    %28 = arith.muli %25, %27 : vector<16x8xi32>
    %29 = arith.addi %28, %26 : vector<16x8xi32>
    %c8_i32_11 = arith.constant 8 : i32
    %30 = arith.subi %c8_i32_11, %24 : i32
    %31 = vector.broadcast %30 : i32 to vector<16x8xi32>
    %32 = arith.cmpi slt, %29, %31 : vector<16x8xi32>
    %cst_12 = arith.constant 0.000000e+00 : f32
    %33 = vector.broadcast %cst_12 : f32 to vector<16x8xf32>
    %34 = arith.maximumf %20, %33 : vector<16x8xf32>
    %cst_13 = arith.constant 0.000000e+00 : f32
    %35 = vector.broadcast %cst_13 : f32 to vector<16x8xf32>
    %36 = arith.select %32, %34, %35 : vector<16x8xi1>, vector<16x8xf32>
    %c0_14 = arith.constant 0 : index
    %c0_15 = arith.constant 0 : index
    %37 = vector.load %arg7[%c0_14, %c0_15] : memref<1x8xf32, #tpu.memory_space<vmem>>, vector<1x8xf32>
    %cst_16 = arith.constant dense<0.000000e+00> : vector<8xf32>
    %38 = vector.multi_reduction <add>, %36, %cst_16 [0] : vector<16x8xf32> to vector<8xf32>
    %39 = vector.shape_cast %38 : vector<8xf32> to vector<1x8xf32>
    %40 = arith.addf %37, %39 : vector<1x8xf32>
    %c0_17 = arith.constant 0 : index
    %c0_18 = arith.constant 0 : index
    %41 = vector.load %arg7[%c0_17, %c0_18] : memref<1x8xf32, #tpu.memory_space<vmem>>, vector<1x8xf32>
    tpu.vector_store %arg7[%c0_17, %c0_18], %40 {strides = array<i32>} : memref<1x8xf32, #tpu.memory_space<vmem>>, vector<1x8xf32>,
    %c0_i32_19 = arith.constant 0 : i32
    %42 = arith.cmpi eq, %arg1, %c0_i32_19 : i32
    %43 = arith.extui %42 : i1 to i32
    %c0_i32_20 = arith.constant 0 : i32
    %44 = arith.cmpi ne, %43, %c0_i32_20 : i32
    scf.if %44 {
      %c0_21 = arith.constant 0 : index
      %c0_22 = arith.constant 0 : index
      %45 = vector.load %arg7[%c0_21, %c0_22] : memref<1x8xf32, #tpu.memory_space<vmem>>, vector<1x8xf32>
      %cst_23 = arith.constant dense<0.000000e+00> : vector<1xf32>
      %46 = vector.multi_reduction <add>, %45, %cst_23 [1] : vector<1x8xf32> to vector<1xf32>
      %47 = vector.shape_cast %46 : vector<1xf32> to vector<1x1xf32>
      %48 = vector.shape_cast %47 : vector<1x1xf32> to vector<1x1x1xf32>
      %49 = vector.shape_cast %48 : vector<1x1x1xf32> to vector<1x1x1xf32>
      %50 = vector.broadcast %49 : vector<1x1x1xf32> to vector<1x8x128xf32>
      %c0_24 = arith.constant 0 : index
      %c0_25 = arith.constant 0 : index
      %c0_26 = arith.constant 0 : index
      %51 = vector.load %arg6[%c0_24, %c0_25, %c0_26] : memref<1x8x128xf32, #tpu.memory_space<vmem>>, vector<1x8x128xf32>
      tpu.vector_store %arg6[%c0_24, %c0_25, %c0_26], %50 {strides = array<i32>} : memref<1x8x128xf32, #tpu.memory_space<vmem>>, vector<1x8x128xf32>,
    } else {
    }
    return
  }
  func.func @transform_0(%arg0: i32, %arg1: i32) -> (i32, i32) {
    %c0_i32 = arith.constant 0 : i32
    %c0_i32_0 = arith.constant 0 : i32
    %c0_i32_1 = arith.constant 0 : i32
    return %c0_i32, %c0_i32_0 : i32, i32
  }
  func.func @transform_1(%arg0: i32, %arg1: i32) -> (i32, i32) {
    %c1_i32 = arith.constant 1 : i32
    %0 = arith.muli %arg0, %c1_i32 : i32
    %1 = arith.addi %0, %arg1 : i32
    %c0_i32 = arith.constant 0 : i32
    %2 = arith.minsi %1, %c0_i32 : i32
    %c0_i32_0 = arith.constant 0 : i32
    %c0_i32_1 = arith.constant 0 : i32
    return %2, %c0_i32_0 : i32, i32
  }
  func.func @transform_2(%arg0: i32, %arg1: i32) -> (i32, i32) {
    %c1_i32 = arith.constant 1 : i32
    %0 = arith.muli %arg0, %c1_i32 : i32
    %1 = arith.addi %0, %arg1 : i32
    %c0_i32 = arith.constant 0 : i32
    %2 = arith.minsi %1, %c0_i32 : i32
    %c0_i32_0 = arith.constant 0 : i32
    %c0_i32_1 = arith.constant 0 : i32
    return %2, %c0_i32_0 : i32, i32
  }
  func.func @transform_3(%arg0: i32, %arg1: i32) -> (i32, i32) {
    %c1_i32 = arith.constant 1 : i32
    %0 = arith.muli %arg0, %c1_i32 : i32
    %1 = arith.addi %0, %arg1 : i32
    %c0_i32 = arith.constant 0 : i32
    %2 = arith.minsi %1, %c0_i32 : i32
    %c0_i32_0 = arith.constant 0 : i32
    %c0_i32_1 = arith.constant 0 : i32
    return %2, %c0_i32_0 : i32, i32
  }
  func.func @transform_4(%arg0: i32, %arg1: i32) -> (i32, i32, i32) {
    %c0_i32 = arith.constant 0 : i32
    %c0_i32_0 = arith.constant 0 : i32
    %c0_i32_1 = arith.constant 0 : i32
    return %arg0, %c0_i32, %c0_i32_0 : i32, i32, i32
  }
}

</mosaic_0001>

<bundles_post_ra>
// kernel: tpu_custom_call.1
= control target key start
LH: loop header
LB: loop body
LE: loop exit
PB: predicated region body
PF: predicated region fallthrough
CT: control target
= control target key end

     0   :  { %s812_s0 = inlined_call_operand.vmem [shape: bf16[256,8], index: 0, kind: input, shape index: {}]   ;;  %s813_s1 = inlined_call_operand.vmem [shape: f32[16,256], index: 1, kind: input, shape index: {}]   ;;  %s814_s2 = inlined_call_operand.vmem [shape: f32[16,256], index: 2, kind: input, shape index: {}]   ;;  %s815_s3 = inlined_call_operand.vmem [shape: f32[16,256], index: 3, kind: input, shape index: {}]   ;;  %s816_s4 = inlined_call_operand.hbm [shape: f32[1,8,128], index: 4, kind: output, shape index: {}]  }
   0x1   :  { %v656_v0 = vld [vmem:[%s812_s0 + $0x40] sm:$0xff]   ;;  %v668_v2 = vld [vmem:[%s812_s0 + $0x48] sm:$0xff]   ;;  %v682_v4 = vld [vmem:[%s812_s0 + $0x50] sm:$0xff]  }
   0x2   :  { %v661_v1 = vld [vmem:[%s812_s0] sm:$0xff]   ;;  %518 = vmatprep.subr.bf16.mxu0 %v656_v0  ;;  %540 = vmatprep.subr.bf16.mxu1 %v656_v0  ;;  %v675_v3 = vld [vmem:[%s812_s0 + $0x8] sm:$0xff]   ;;  %v689_v5 = vld [vmem:[%s812_s0 + $0x10] sm:$0xff]  }
   0x3   :  { %519 = vmatpush3.bf16.msra.mxu0 %v661_v1  ;;  %541 = vmatpush3.bf16.msra.mxu1 %v661_v1  ;;  %v696_v6 = vld [vmem:[%s812_s0 + $0x58] sm:$0xff]   ;;  %v710_v8 = vld [vmem:[%s812_s0 + $0x60] sm:$0xff]   ;;  %v722_v10 = vld [vmem:[%s812_s0 + $0x68] sm:$0xff]  }
   0x4   :  { %520 = vmatprep.subr.bf16.mxu0 %v668_v2  ;;  %542 = vmatprep.subr.bf16.mxu1 %v668_v2  ;;  %v703_v7 = vld [vmem:[%s812_s0 + $0x18] sm:$0xff]   ;;  %v715_v9 = vld [vmem:[%s812_s0 + $0x20] sm:$0xff]   ;;  %v131_v11 = vld [vmem:[%s813_s1 + $0x8] sm:$0xff] }
   0x5   :  { %v133_v12 = vld [vmem:[%s813_s1 + $0x18] sm:$0xff]  ;;  %v135_v13 = vld [vmem:[%s815_s3 + $0x8] sm:$0xff]  ;;  %v130_v20 = vld [vmem:[%s813_s1] sm:$0xff] }
   0x6   :  { %v137_v14 = vld [vmem:[%s815_s3 + $0x18] sm:$0xff]  ;;  %v139_v15 = vld [vmem:[%s814_s2 + $0x8] sm:$0xff]  ;;  %v134_v21 = vld [vmem:[%s815_s3] sm:$0xff] }
   0x7   :  { %521 = vmatpush3.bf16.msra.mxu0 %v675_v3  ;;  %543 = vmatpush3.bf16.msra.mxu1 %v675_v3  ;;  %v141_v16 = vld [vmem:[%s814_s2 + $0x18] sm:$0xff]  ;;  %v747_v17 = vld [vmem:[%s812_s0 + $0x28] sm:$0xff]   ;;  %v143_v18 = vsub.f32 %v135_v13, %v139_v15  ;;  %v136_v22 = vld [vmem:[%s815_s3 + $0x10] sm:$0xff] }
   0x8   :  { %522 = vmatprep.subr.bf16.mxu0 %v682_v4  ;;  %544 = vmatprep.subr.bf16.mxu1 %v682_v4  ;;  %v145_v19 = vsub.f32 %v137_v14, %v141_v16  ;;  %v138_v23 = vld [vmem:[%s814_s2] sm:$0xff]  ;;  %v140_v24 = vld [vmem:[%s814_s2 + $0x10] sm:$0xff] }
   0x9   :  { %v598_v25 = vld [vmem:[%s812_s0 + $0x70] sm:$0xff]   ;;  %v147_v26 = vmul.f32 %v143_v18, %v131_v11  ;;  %v142_v29 = vsub.f32 %v134_v21, %v138_v23 }
   0xa   :  { %v149_v27 = vmul.f32 %v145_v19, %v133_v12  ;;  %v132_v28 = vld [vmem:[%s813_s1 + $0x10] sm:$0xff] }
   0xb   :  { %523 = vmatpush3.bf16.msra.mxu0 %v689_v5  ;;  %545 = vmatpush3.bf16.msra.mxu1 %v689_v5 }
   0xc   :  { %524 = vmatprep.subr.bf16.mxu0 %v696_v6  ;;  %546 = vmatprep.subr.bf16.mxu1 %v696_v6 }
   0xf   :  { %525 = vmatpush3.bf16.msra.mxu0 %v703_v7  ;;  %547 = vmatpush3.bf16.msra.mxu1 %v703_v7 }
  0x10   :  { %526 = vmatprep.subr.bf16.mxu0 %v710_v8  ;;  %548 = vmatprep.subr.bf16.mxu1 %v710_v8 }
  0x13   :  { %527 = vmatpush3.bf16.msra.mxu0 %v715_v9  ;;  %549 = vmatpush3.bf16.msra.mxu1 %v715_v9 }
  0x14   :  { %528 = vmatprep.subr.bf16.mxu0 %v722_v10  ;;  %550 = vmatprep.subr.bf16.mxu1 %v722_v10 }
  0x15   :  { %9 = vsyncpa [#allocation4], 0  ;;  %v144_v30 = vsub.f32 %v136_v22, %v140_v24  ;;  %v183_v31 = vpack.c.bf16 %v149_v27, %v147_v26  ;;  %v146_v32 = vmul.f32 %v142_v29, %v130_v20  ;;  %v599_v33 = vld [vmem:[%s812_s0 + $0x30] sm:$0xff]   ;;  %v600_v35 = vld [vmem:[%s812_s0 + $0x78] sm:$0xff]   ;;  %vm128_vm0 = vcmask 57344  }
  0x16   :  { %v601_v41 = vld [vmem:[%s812_s0 + $0x38] sm:$0xff]   ;;  %v626_v58 = vmov 0.0   ;;  %vm445_vm3 = vcmask 64512   ;;  %s627_s0 = smov [#allocation3]  }
  0x17   :  { %529 = vmatpush3.bf16.msra.mxu0 %v747_v17  ;;  %551 = vmatpush3.bf16.msra.mxu1 %v747_v17  ;;  %v148_v34 = vmul.f32 %v144_v30, %v132_v28  ;;  %v185_v36 = vunpack.c.l.bf16 %v183_v31  ;;  %v187_v37 = vunpack.c.h.bf16 %v183_v31  ;;  %129 = vst.msk [vmem:[#allocation2] sm:$0x1] %vm128_vm0, %v626_v58  ;;  %s476_s16 = sshll.u32 %s627_s0, 4  ;;  %s477_s16 = int_to_ptr.vmem [resolvable:$true] %s476_s16 }
  0x18   :  { %530 = vmatprep.subr.bf16.mxu0 %v598_v25  ;;  %552 = vmatprep.subr.bf16.mxu1 %v598_v25  ;;  %s602_s17 = scalar_lea.vmem %s477_s16, 128  ;;  %p607_p1 = scmp.lt.s32.totalorder %s477_s16, %s477_s16 }
  0x19   :  { %373 = vmatprep.mubr.bf16.mxu1 %v183_v31  ;;  %v182_v38 = vpack.c.bf16 %v148_v34, %v146_v32  ;;  %v189_v39 = vsub.f32 %v147_v26, %v185_v36  ;;  %v191_v40 = vsub.f32 %v149_v27, %v187_v37  ;;  %p603_p0 = scmp.ne.s32.totalorder %s477_s16, %s602_s17  ;;  %p608_p2 = scmp.lt.s32.totalorder %s602_s17, %s602_s17 }
  0x1b   :  { %531 = vmatpush3.bf16.msra.mxu0 %v599_v33  ;;  %553 = vmatpush3.bf16.msra.mxu1 %v599_v33  ;;  %v184_v42 = vunpack.c.l.bf16 %v182_v38  ;;  %v186_v43 = vunpack.c.h.bf16 %v182_v38  ;;  %v193_v44 = vpack.c.bf16 %v191_v40, %v189_v39  ;;  %p609_p3 = por %p608_p2, %p607_p1 }
  0x1c   :  { %532 = vmatprep.subr.bf16.mxu0 %v600_v35  ;;  %554 = vmatprep.subr.bf16.mxu1 %v600_v35 }
  0x1d   :  { %v188_v45 = vsub.f32 %v146_v32, %v184_v42  ;;  %v190_v46 = vsub.f32 %v148_v34, %v186_v43  ;;  %332 = vmatprep.mubr.bf16.mxu0 %v193_v44  ;;  %v195_v47 = vunpack.c.l.bf16 %v193_v44  ;;  %v197_v48 = vunpack.c.h.bf16 %v193_v44  ;;  %p610_p4 = pnand %p609_p3, %p603_p0 }
  0x1e   :  { %v444_v37 = vld [vmem:[#allocation2] sm:$0x1] }
  0x1f   :  { %533 = vmatpush3.bf16.msra.mxu0 %v601_v41  ;;  %555 = vmatpush3.bf16.msra.mxu1 %v601_v41  ;;  %v192_v49 = vpack.c.bf16 %v190_v46, %v188_v45  ;;  %v199_v50 = vsub.f32 %v189_v39, %v195_v47  ;;  %v201_v51 = vsub.f32 %v191_v40, %v197_v48 }
  0x20   :  { %562 = vmatprep.subr.bf16.mxu0 %v656_v0 }
  0x21   :  { %v203_v52 = vpack.c.bf16 %v201_v51, %v199_v50  ;;  %v194_v53 = vunpack.c.l.bf16 %v192_v49  ;;  %v196_v54 = vunpack.c.h.bf16 %v192_v49 }
  0x22   :  { %333 = vmatmul.mubr.bf16.vlgmr.msra.gmra.mrb[0].mxu0 %v192_v49  ;;  %374 = vmatmul.mubr.bf16.vlgmr.msra.gmra.mrb[0].mxu1 %v182_v38 }
  0x23   :  { %563 = vmatpush3.bf16.msra.mxu0 %v661_v1  ;;  %414 = vmatprep.mubr.bf16.mxu0 %v203_v52  ;;  %v198_v55 = vsub.f32 %v188_v45, %v194_v53  ;;  %v200_v56 = vsub.f32 %v190_v46, %v196_v54 }
  0x24   :  { %564 = vmatprep.subr.bf16.mxu0 %v668_v2 }
  0x25   :  { %v202_v57 = vpack.c.bf16 %v200_v56, %v198_v55 }
  0x27   :  { %565 = vmatpush3.bf16.msra.mxu0 %v675_v3 }
  0x28   :  { %566 = vmatprep.subr.bf16.mxu0 %v682_v4 }
  0x2b   :  { %567 = vmatpush3.bf16.msra.mxu0 %v689_v5 }
  0x2c   :  { %568 = vmatprep.subr.bf16.mxu0 %v696_v6 }
  0x2f   :  { %569 = vmatpush3.bf16.msra.mxu0 %v703_v7 }
  0x30   :  { %570 = vmatprep.subr.bf16.mxu0 %v710_v8 }
  0x33   :  { %571 = vmatpush3.bf16.msra.mxu0 %v715_v9  ;;  %v427_v9 = vlaneseq }
  0x34   :  { %572 = vmatprep.subr.bf16.mxu0 %v722_v10 }
  0x35   :  { %v428_v10 = vshrl.u32 %v427_v9, 7  ;;  %v431_v12 = vand.u32 127, %v427_v9 }
  0x37   :  { %573 = vmatpush3.bf16.msra.mxu0 %v747_v17  ;;  %v429_v11 = vadd.s32 8, %v428_v10  ;;  %v432_v13 = vmul.u32 8, %v428_v10  ;;  %v467_v42 = vsub.s32 0, %v428_v10 }
  0x38   :  { %574 = vmatprep.subr.bf16.mxu0 %v598_v25 }
  0x39   :  { %v433_v14 = vmul.u32 8, %v429_v11  ;;  %v434_v17 = vadd.s32 %v432_v13, %v431_v12 }
  0x3b   :  { %575 = vmatpush3.bf16.msra.mxu0 %v599_v33  ;;  %v435_v21 = vadd.s32 %v433_v14, %v431_v12  ;;  %vm438_vm1 = vcmp.lt.s32.totalorder %v434_v17, 8 }
  0x3c   :  { %576 = vmatprep.subr.bf16.mxu0 %v600_v35 }
  0x3d   :  { %vm439_vm2 = vcmp.lt.s32.totalorder %v435_v21, 8 }
  0x3f   :  { %577 = vmatpush3.bf16.msra.mxu0 %v601_v41 }
  0x42   :  { %415 = vmatmul.mubr.bf16.vlgmr.msra.gmra.mrb[4].mxu0 %v202_v57 }
  0xf5   :  { %v534_v59 = vpop.f32.mrb[0].mxu0  ;;  %v556_v60 = vpop.f32.mrb[0].mxu1 }
  0xf6   :  { %v535_v61 = vpop.f32.mrb[1].mxu0  ;;  %v557_v62 = vpop.f32.mrb[1].mxu1 }
  0xf7   :  { %v536_v63 = vadd.f32 %v535_v61, %v534_v59  ;;  %v558_v0 = vadd.f32 %v557_v62, %v556_v60  ;;  %v537_v1 = vpop.f32.mrb[2].mxu0  ;;  %v559_v2 = vpop.f32.mrb[2].mxu1 }
  0xf8   :  { %v538_v3 = vpop.f32.mrb[3].mxu0  ;;  %v560_v4 = vpop.f32.mrb[3].mxu1 }
  0xf9   :  { %v376_v5 = vadd.f32 %v558_v0, %v536_v63  ;;  %v539_v6 = vadd.f32 %v538_v3, %v537_v1  ;;  %v561_v7 = vadd.f32 %v560_v4, %v559_v2 }
  0xfb   :  { %v379_v8 = vadd.f32 %v561_v7, %v539_v6 }
 0x115   :  { %v578_v15 = vpop.f32.mrb[4].mxu0 }
 0x116   :  { %v579_v16 = vpop.f32.mrb[5].mxu0 }
 0x117   :  { %v580_v18 = vadd.f32 %v579_v16, %v578_v15  ;;  %v581_v19 = vpop.f32.mrb[6].mxu0 }
 0x118   :  { %v582_v20 = vpop.f32.mrb[7].mxu0 }
 0x119   :  { %v423_v22 = vadd.f32 %v580_v18, %v376_v5  ;;  %v583_v23 = vadd.f32 %v582_v20, %v581_v19 }
 0x11b   :  { %v440_v24 = vmax.f32 %v423_v22, 0.0  ;;  %v424_v25 = vadd.f32 %v583_v23, %v379_v8 }
 0x11d   :  { %v442_v26 = vsel %vm438_vm1, %v440_v24, 0.0  ;;  %v441_v27 = vmax.f32 %v424_v25, 0.0 }
 0x11e   :  { %v446_v29 = vsel %vm445_vm3, %v442_v26, 0.0 }
 0x11f   :  { %v443_v28 = vsel %vm439_vm2, %v441_v27, 0.0 }
 0x120   :  { %v447_v30 = vsel %vm445_vm3, %v443_v28, 0.0 }
 0x121   :  { %v448_v31 = vadd.f32 %v447_v30, %v446_v29 }
 0x123   :  { %v449_v32 = vrot.slane %v448_v31, 4 }
 0x125   :  { %v450_v33 = vadd.f32 %v449_v32, %v448_v31 }
 0x127   :  { %v451_v34 = vrot.slane %v450_v33, 2 }
 0x129   :  { %v452_v35 = vadd.f32 %v451_v34, %v450_v33 }
 0x12b   :  { %v453_v36 = vrot.slane %v452_v35, 1 }
 0x12d   :  { %v454_v38 = vadd.f32 %v453_v36, %v452_v35 }
 0x12f   :  { %v455_v39 = vadd.f32 %v454_v38, %v444_v37 }
 0x131   :  { %457 = vst.msk [vmem:[#allocation2] sm:$0x1] %vm128_vm0, %v455_v39 }
 0x138   :  { %v461_v40 = vld [vmem:[#allocation2] sm:$0x1] }
 0x139   :  { %v462_v41 = vsel %vm128_vm0, %v461_v40, 0.0 }
 0x13a   :  { %463 = vadd.xlane.f32.xlu0 %v462_v41 }
 0x1c7   :  { %v464_v43 = vpop.xlane.xlu0 %463 }
 0x1c8   :  { %v468_v44 = vrot.slane %v464_v43, %v467_v42 }
 0x1ca   :  { %469 = vst [vmem:[#allocation3] sm:$0xff] %v468_v44 }
 0x1cb   :  { %613 = shalt.err (!%p610_p4)
}
 0x1cc   :  { %s614_s20 = scalar_lea.hbm %s816_s4, 128 }
 0x1cd   :  { %p615_p5 = scmp.ne.s32.totalorder %s816_s4, %s614_s20  ;;  %p618_p6 = scmp.lt.u32.totalorder %s614_s20, %s816_s4 }
 0x1cf   :  { %p620_p7 = pnand %p618_p6, %p615_p5 }
 0x1d1   :  { %623 = shalt.err (!%p620_p7)
}
 0x1d2   :  { %479 = dma.vmem_to_hbm [thread:$0]  %s477_s16, 128, %s816_s4, [#allocation4]  }
 0x1d3   :  { %624 = dma.done.wait [#allocation4], 128  }
 0x1d4   :  { %625 = vsyncadd [#allocation4], 4294967168 }
 0x1d5   :  { %483 = vsyncpa [#allocation4], 1 }

</bundles_post_ra>
